<compile_context>
chip_gen: v7x
topology: tpu7x:2x2x1
jax: 0.10.0
libtpu: 0.0.40
codegen_flags: <defaults>
</compile_context>

<pallas_src>
import jax
import jax.numpy as jnp
from jax import lax
from jax.experimental import pallas as pl
from jax.experimental.pallas import tpu as pltpu

# ---- model sizes (small, consistent with the module's forward) --------------
B = 2             # batch (example; the wrapper derives batch from the input)
T = 8             # encoder output sequence length (stub)
F = 128           # raw waveform samples per encoder frame (stub)
H = 32            # encoder hidden size (stand-in for WavLM hidden_size)
C = 256           # classifier hidden width  (nn.Linear(hidden_size, 256))
E = 7             # num_emotions
E_PAD = 128       # lane-dense padded logits width (unmasked stores); sliced to E outside
LN_EPS = 1e-5     # nn.LayerNorm default eps

# Packed-parameter layout (all f32):
#   W slab: (F + H + C, C) = (416, 256)
#     rows [0,   F)      cols [0, H)     -> w_enc (F, H)        encoder-stub projection
#     rows [F,   F+H)    cols [0, C)     -> w1    (H, C)        Linear(H, 256)
#     rows [F+H, F+H+C)  cols [0, E_PAD) -> w2    (C, E_PAD)    Linear(256, E), zero-padded
#   V slab: (8, C) = (8, 256)
#     row 0 cols [0, H)     -> b_enc
#     row 1 cols [0, C)     -> b1
#     row 2 cols [0, C)     -> ln_gamma
#     row 3 cols [0, C)     -> ln_beta
#     row 4 cols [0, E_PAD) -> b2 (zero-padded)
# All weights are stored pre-transposed as (in_features, out_features) so the
# kernel never transposes (x @ W + b == PyTorch's x @ W_pt.T + b).


# =============================================================================
# Single fused kernel: encoder stub -> CLS pooling -> classifier MLP
# =============================================================================
def _fused_forward_kernel(cls_ref,   # (batch, F)  CLS frame of the waveform
                          w_ref,     # (F+H+C, C)  packed weights
                          v_ref,     # (8, C)      packed biases / LayerNorm params
                          o_ref):    # (batch, E_PAD) lane-dense logits
    # Static-offset views into the packed parameter slabs (no runtime cost to
    # form the views; loads are plain VMEM reads).
    w_enc = w_ref[0:F, 0:H]                                   # (F, H)
    w1    = w_ref[F:F + H, :]                                 # (H, C)
    w2    = w_ref[F + H:F + H + C, 0:E_PAD]                   # (C, E_PAD)
    b_enc = v_ref[0:1, 0:H]                                   # (1, H)
    b1    = v_ref[1:2, :]                                     # (1, C)
    ln_g  = v_ref[2:3, :]                                     # (1, C)
    ln_b  = v_ref[3:4, :]                                     # (1, C)
    b2    = v_ref[4:5, 0:E_PAD]                               # (1, E_PAD)

    # --- encoder stub + 'cls' pooling -----------------------------------------
    # TODO(synk): stands in for the pretrained WavLM encoder; only the CLS frame
    # is projected, which equals last_hidden_state[:, 0, :] for this stub.
    pooled = jnp.tanh(
        jnp.dot(cls_ref[...], w_enc, preferred_element_type=jnp.float32)
        + b_enc)                                              # (batch, H)

    # --- classifier: Linear -> ReLU -> LayerNorm -> Dropout -> Linear ---------
    h = jnp.dot(pooled, w1, preferred_element_type=jnp.float32) + b1   # (batch, C)
    h = jnp.maximum(h, 0.0)                                            # ReLU

    mu = jnp.mean(h, axis=-1, keepdims=True)
    var = jnp.mean(jnp.square(h - mu), axis=-1, keepdims=True)
    h = (h - mu) * lax.rsqrt(var + LN_EPS) * ln_g + ln_b               # LayerNorm(256)

    # Dropout(0.3) is identity at inference time.
    o_ref[...] = jnp.dot(h, w2, preferred_element_type=jnp.float32) + b2


def wavlm_emotion_classifier(waveform, w_packed, v_packed):
    # Matches `if waveform.ndim == 3: waveform = waveform.squeeze(1)` — only a
    # size-1 channel dim is squeezed (anything else is a spec violation).
    if waveform.ndim == 3:
        assert waveform.shape[1] == 1, "expected a single-channel waveform"
        waveform = jnp.squeeze(waveform, axis=1)
    batch = waveform.shape[0]

    # Only the CLS frame is needed by the kernel (== frames[:, 0, :]).
    cls_frame = waveform[:, :F]                               # (batch, F)

    vmem = pl.BlockSpec(memory_space=pltpu.MemorySpace.VMEM)
    logits_pad = pl.pallas_call(
        _fused_forward_kernel,
        out_shape=jax.ShapeDtypeStruct((batch, E_PAD), jnp.float32),
        in_specs=[vmem, vmem, vmem],
        out_specs=vmem,
    )(cls_frame, w_packed, v_packed)
    return {"emo": logits_pad[:, :E]}


# =============================================================================
# Parameters, packing, and pure-JAX reference
# =============================================================================
def init_params(key):
    ks = jax.random.split(key, 8)

    def w(k, shape, scale=0.05):
        return (scale * jax.random.normal(k, shape)).astype(jnp.float32)

    return dict(
        # encoder stub (frame projection)
        w_enc=w(ks[0], (F, H)), b_enc=w(ks[1], (H,), 0.02),
        # classifier: Linear(H,256) -> ReLU -> LayerNorm(256) -> Dropout -> Linear(256,E)
        w1=w(ks[2], (H, C)), b1=w(ks[3], (C,), 0.02),
        ln_g=(1.0 + w(ks[4], (C,), 0.02)), ln_b=w(ks[5], (C,), 0.02),
        w2=w(ks[6], (C, E)), b2=w(ks[7], (E,), 0.02),
    )


def pack_params(p):
    """Pack the 9 small parameter arrays into 2 VMEM-friendly slabs (done once)."""
    W = jnp.zeros((F + H + C, C), jnp.float32)
    W = W.at[0:F, 0:H].set(p["w_enc"])
    W = W.at[F:F + H, :].set(p["w1"])
    W = W.at[F + H:F + H + C, 0:E].set(p["w2"])     # cols E..E_PAD stay zero

    V = jnp.zeros((8, C), jnp.float32)
    V = V.at[0, 0:H].set(p["b_enc"])
    V = V.at[1, :].set(p["b1"])
    V = V.at[2, :].set(p["ln_g"])
    V = V.at[3, :].set(p["ln_b"])
    V = V.at[4, 0:E].set(p["b2"])                   # cols E..E_PAD stay zero
    return W, V


def _reference(waveform, p):
    """Pure-JAX reference of the same forward pass (same encoder stub)."""
    if waveform.ndim == 3:
        waveform = jnp.squeeze(waveform, axis=1)
    frames = waveform.reshape(waveform.shape[0], -1, F)
    feat = jnp.tanh(frames @ p["w_enc"] + p["b_enc"])     # (B, T, H)
    pooled = feat[:, 0, :]                                # 'cls' pooling
    h = jnp.maximum(pooled @ p["w1"] + p["b1"], 0.0)
    mu = jnp.mean(h, -1, keepdims=True)
    var = jnp.mean(jnp.square(h - mu), -1, keepdims=True)
    h = (h - mu) / jnp.sqrt(var + LN_EPS) * p["ln_g"] + p["ln_b"]
    return {"emo": h @ p["w2"] + p["b2"]}


if __name__ == "__main__":
    key = jax.random.PRNGKey(0)
    pkey, xkey = jax.random.split(key)
    params = init_params(pkey)
    w_packed, v_packed = pack_params(params)               # packed once, outside the kernel
    waveform = jax.random.normal(xkey, (B, 1, T * F), dtype=jnp.float32)

    out = jax.jit(wavlm_emotion_classifier)(waveform, w_packed, v_packed)
    jax.block_until_ready(out)

    assert out["emo"].shape == (B, E)
    assert out["emo"].dtype == jnp.float32

    ref = _reference(waveform, params)
    assert jnp.allclose(out["emo"], ref["emo"], rtol=1e-3, atol=1e-3), (
        "Pallas output diverges from pure-JAX reference")

    print("KERNEL_OK")
</pallas_src>

<mosaic_0001>
module attributes {stable_mosaic.version = 11 : i64} {
  func.func @_fused_forward_kernel(%arg0: memref<2x128xf32, #tpu.memory_space<vmem>>, %arg1: memref<416x256xf32, #tpu.memory_space<vmem>>, %arg2: memref<8x256xf32, #tpu.memory_space<vmem>>, %arg3: memref<2x128xf32, #tpu.memory_space<vmem>>) attributes {dimension_semantics = [], scalar_prefetch = 0 : i64, scratch_operands = 0 : i64, tpu.core_type = #tpu.core_type<tc>} {
    %c0 = arith.constant 0 : index
    %c0_0 = arith.constant 0 : index
    %0 = vector.load %arg1[%c0, %c0_0] : memref<416x256xf32, #tpu.memory_space<vmem>>, vector<128x32xf32>
    %c128 = arith.constant 128 : index
    %c0_1 = arith.constant 0 : index
    %1 = vector.load %arg1[%c128, %c0_1] : memref<416x256xf32, #tpu.memory_space<vmem>>, vector<32x256xf32>
    %c160 = arith.constant 160 : index
    %c0_2 = arith.constant 0 : index
    %2 = vector.load %arg1[%c160, %c0_2] : memref<416x256xf32, #tpu.memory_space<vmem>>, vector<256x128xf32>
    %c0_3 = arith.constant 0 : index
    %c0_4 = arith.constant 0 : index
    %3 = vector.load %arg2[%c0_3, %c0_4] : memref<8x256xf32, #tpu.memory_space<vmem>>, vector<1x32xf32>
    %c1 = arith.constant 1 : index
    %c0_5 = arith.constant 0 : index
    %4 = vector.load %arg2[%c1, %c0_5] : memref<8x256xf32, #tpu.memory_space<vmem>>, vector<1x256xf32>
    %c2 = arith.constant 2 : index
    %c0_6 = arith.constant 0 : index
    %5 = vector.load %arg2[%c2, %c0_6] : memref<8x256xf32, #tpu.memory_space<vmem>>, vector<1x256xf32>
    %c3 = arith.constant 3 : index
    %c0_7 = arith.constant 0 : index
    %6 = vector.load %arg2[%c3, %c0_7] : memref<8x256xf32, #tpu.memory_space<vmem>>, vector<1x256xf32>
    %c4 = arith.constant 4 : index
    %c0_8 = arith.constant 0 : index
    %7 = vector.load %arg2[%c4, %c0_8] : memref<8x256xf32, #tpu.memory_space<vmem>>, vector<1x128xf32>
    %c0_9 = arith.constant 0 : index
    %c0_10 = arith.constant 0 : index
    %8 = vector.load %arg0[%c0_9, %c0_10] : memref<2x128xf32, #tpu.memory_space<vmem>>, vector<2x128xf32>
    %cst = arith.constant dense<0.000000e+00> : vector<2x32xf32>
    %9 = tpu.matmul %8, %0, %cst {dimension_numbers = #tpu.dot_dimension_numbers<[1], [0], [0], [1], [0, 0, 1, 1], [], []>} : vector<2x128xf32>, vector<128x32xf32>, vector<2x32xf32> -> vector<2x32xf32>
    %10 = vector.broadcast %3 : vector<1x32xf32> to vector<2x32xf32>
    %11 = arith.addf %9, %10 : vector<2x32xf32>
    %12 = math.tanh %11 : vector<2x32xf32>
    %cst_11 = arith.constant dense<0.000000e+00> : vector<2x256xf32>
    %13 = tpu.matmul %12, %1, %cst_11 {dimension_numbers = #tpu.dot_dimension_numbers<[1], [0], [0], [1], [0, 0, 1, 1], [], []>} : vector<2x32xf32>, vector<32x256xf32>, vector<2x256xf32> -> vector<2x256xf32>
    %14 = vector.broadcast %4 : vector<1x256xf32> to vector<2x256xf32>
    %15 = arith.addf %13, %14 : vector<2x256xf32>
    %cst_12 = arith.constant 0.000000e+00 : f32
    %16 = vector.broadcast %cst_12 : f32 to vector<2x256xf32>
    %17 = arith.maximumf %15, %16 : vector<2x256xf32>
    %cst_13 = arith.constant dense<0.000000e+00> : vector<2xf32>
    %18 = vector.multi_reduction <add>, %17, %cst_13 [1] : vector<2x256xf32> to vector<2xf32>
    %19 = vector.shape_cast %18 : vector<2xf32> to vector<2x1xf32>
    %cst_14 = arith.constant 2.560000e+02 : f32
    %20 = vector.broadcast %cst_14 : f32 to vector<2x1xf32>
    %21 = arith.divf %19, %20 : vector<2x1xf32>
    %22 = vector.broadcast %21 : vector<2x1xf32> to vector<2x256xf32>
    %23 = arith.subf %17, %22 : vector<2x256xf32>
    %24 = arith.mulf %23, %23 : vector<2x256xf32>
    %cst_15 = arith.constant dense<0.000000e+00> : vector<2xf32>
    %25 = vector.multi_reduction <add>, %24, %cst_15 [1] : vector<2x256xf32> to vector<2xf32>
    %26 = vector.shape_cast %25 : vector<2xf32> to vector<2x1xf32>
    %cst_16 = arith.constant 2.560000e+02 : f32
    %27 = vector.broadcast %cst_16 : f32 to vector<2x1xf32>
    %28 = arith.divf %26, %27 : vector<2x1xf32>
    %29 = vector.broadcast %21 : vector<2x1xf32> to vector<2x256xf32>
    %30 = arith.subf %17, %29 : vector<2x256xf32>
    %cst_17 = arith.constant 9.99999974E-6 : f32
    %31 = vector.broadcast %cst_17 : f32 to vector<2x1xf32>
    %32 = arith.addf %28, %31 : vector<2x1xf32>
    %33 = math.rsqrt %32 : vector<2x1xf32>
    %34 = vector.broadcast %33 : vector<2x1xf32> to vector<2x256xf32>
    %35 = arith.mulf %30, %34 : vector<2x256xf32>
    %36 = vector.broadcast %5 : vector<1x256xf32> to vector<2x256xf32>
    %37 = arith.mulf %35, %36 : vector<2x256xf32>
    %38 = vector.broadcast %6 : vector<1x256xf32> to vector<2x256xf32>
    %39 = arith.addf %37, %38 : vector<2x256xf32>
    %cst_18 = arith.constant dense<0.000000e+00> : vector<2x128xf32>
    %40 = tpu.matmul %39, %2, %cst_18 {dimension_numbers = #tpu.dot_dimension_numbers<[1], [0], [0], [1], [0, 0, 1, 1], [], []>} : vector<2x256xf32>, vector<256x128xf32>, vector<2x128xf32> -> vector<2x128xf32>
    %41 = vector.broadcast %7 : vector<1x128xf32> to vector<2x128xf32>
    %42 = arith.addf %40, %41 : vector<2x128xf32>
    %c0_19 = arith.constant 0 : index
    %c0_20 = arith.constant 0 : index
    %43 = vector.load %arg3[%c0_19, %c0_20] : memref<2x128xf32, #tpu.memory_space<vmem>>, vector<2x128xf32>
    tpu.vector_store %arg3[%c0_19, %c0_20], %42 {strides = array<i32>} : memref<2x128xf32, #tpu.memory_space<vmem>>, vector<2x128xf32>,
    return
  }
}

</mosaic_0001>

<bundles_post_ra>
// kernel: wavlm_emotion_classifier.1
= control target key start
LH: loop header
LB: loop body
LE: loop exit
PB: predicated region body
PF: predicated region fallthrough
CT: control target
= control target key end

     0   :  { %8 = vsyncpa [#allocation3], 0  ;;  %s684_s0 = inlined_call_operand.vmem [shape: f32[2,128], index: 0, kind: input, shape index: {}]   ;;  %s685_s1 = inlined_call_operand.hbm [shape: f32[416,256], index: 1, kind: input, shape index: {}]   ;;  %s686_s2 = inlined_call_operand.vmem [shape: f32[8,256], index: 2, kind: input, shape index: {}]   ;;  %s687_s3 = inlined_call_operand.hbm [shape: f32[2,128], index: 3, kind: output, shape index: {}]  }
   0x1   :  { %9 = vsyncpa [#allocation4], 0  ;;  %s601_s12 = smov [#allocation2]   ;;  %s553_s16 = scalar_lea.hbm %s685_s1, 13312 }
   0x2   :  { %s17_s13 = sshll.u32 %s601_s12, 4  ;;  %p554_p0 = scmp.ne.s32.totalorder %s685_s1, %s553_s16  ;;  %s18_s13 = int_to_ptr.vmem [resolvable:$true] %s17_s13 }
   0x3   :  { %p557_p1 = scmp.lt.u32.totalorder %s553_s16, %s685_s1 }
   0x5   :  { %p559_p2 = pnand %p557_p1, %p554_p0 }
   0x7   :  { %562 = shalt.err (!%p559_p2)
}
   0x8   :  { %s563_s21 = scalar_lea.vmem %s18_s13, 13312  ;;  %p568_p4 = scmp.lt.s32.totalorder %s18_s13, %s18_s13 }
   0x9   :  { %p564_p3 = scmp.ne.s32.totalorder %s18_s13, %s563_s21  ;;  %p569_p5 = scmp.lt.s32.totalorder %s563_s21, %s563_s21 }
   0xb   :  { %p570_p6 = por %p569_p5, %p568_p4 }
   0xd   :  { %p571_p7 = pnand %p570_p6, %p564_p3 }
   0xf   :  { %574 = shalt.err (!%p571_p7)
}
  0x10   :  { %s602_s22 = smov 256   ;;  %s603_s23 = smov 16  }
  0x11   :  { %23 = dma.hbm_to_vmem [thread:$0]  %s685_s1, 13312, %s18_s13, [#allocation3], %s602_s22, %s602_s22, %s603_s23  }
  0x12   :  { %597 = dma.done.wait [#allocation3], 13312  }
  0x13   :  { %598 = vsyncadd [#allocation3], 4294953984  ;;  %v604_v0 = vmov 0.0|0.0   ;;  %vm605_vm0 = vmmov 0   ;;  %v606_v1 = vmov 0.0   ;;  %v29_v2 = vld [vmem:[#allocation2] sm:$0xff]  ;;  %v166_v44 = vlaneseq }
  0x14   :  { %478 = vmatprep.subr.bf16.mxu0 %v604_v0  ;;  %475 = vmatprep.mubr.msk.f32.mxu0 %vm605_vm0, %v606_v1  ;;  %v30_v3 = vld [vmem:[#allocation2 + $0x10] sm:$0xff]  ;;  %v31_v4 = vld [vmem:[#allocation2 + $0x20] sm:$0xff]  ;;  %v46_v27 = vld [vmem:[#allocation2 + $0x108] sm:$0xff]  ;;  %vm176_vm1 = vcmask 261120   ;;  %vm253_vm2 = vcmask 1041408   ;;  %s607_s9 = smov [#allocation5]  }
  0x15   :  { %244 = vmatprep.mubr.f32.mxu1 %v606_v1  ;;  %v479_v5 = vpack.c.bf16 %v30_v3, %v29_v2  ;;  %v32_v6 = vld [vmem:[#allocation2 + $0x30] sm:$0xff]  ;;  %v33_v8 = vld [vmem:[#allocation2 + $0x40] sm:$0xff]  ;;  %v48_v28 = vld [vmem:[#allocation2 + $0x118] sm:$0xff]  ;;  %v167_v45 = vshrl.u32 %v166_v44, 7  ;;  %s378_s10 = sshll.u32 %s607_s9, 4  ;;  %s379_s10 = int_to_ptr.vmem [resolvable:$true] %s378_s10 }
  0x16   :  { %v482_v7 = vpack.c.bf16 %v32_v6, %v31_v4  ;;  %v34_v9 = vld [vmem:[#allocation2 + $0x50] sm:$0xff]  ;;  %v35_v11 = vld [vmem:[#allocation2 + $0x60] sm:$0xff]  ;;  %v502_v30 = vpack.c.bf16 %v48_v28, %v46_v27  ;;  %v50_v32 = vld [vmem:[#allocation2 + $0x128] sm:$0xff]  ;;  %s575_s11 = scalar_lea.vmem %s379_s10, 32  ;;  %p580_p9 = scmp.lt.s32.totalorder %s379_s10, %s379_s10 }
  0x17   :  { %480 = vmatpush3.bf16.msra.mxu0 %v479_v5  ;;  %v485_v10 = vpack.c.bf16 %v34_v9, %v33_v8  ;;  %v36_v12 = vld [vmem:[#allocation2 + $0x70] sm:$0xff]  ;;  %v37_v14 = vld [vmem:[#allocation2 + $0x80] sm:$0xff]  ;;  %v52_v33 = vld [vmem:[#allocation2 + $0x138] sm:$0xff]  ;;  %v646_v46 = vsub.s32 0, %v167_v45  ;;  %v651_v48 = vsub.s32 1, %v167_v45  ;;  %p576_p8 = scmp.ne.s32.totalorder %s379_s10, %s575_s11  ;;  %p581_p10 = scmp.lt.s32.totalorder %s575_s11, %s575_s11 }
  0x18   :  { %481 = vmatprep.subr.bf16.mxu0 %v604_v0  ;;  %v488_v13 = vpack.c.bf16 %v36_v12, %v35_v11  ;;  %v38_v15 = vld [vmem:[#allocation2 + $0x90] sm:$0xff]  ;;  %v39_v17 = vld [vmem:[#allocation2 + $0xa0] sm:$0xff]  ;;  %v506_v35 = vpack.c.bf16 %v52_v33, %v50_v32  ;;  %503 = vmatprep.subr.bf16.mxu1 %v502_v30 }
  0x19   :  { %v491_v16 = vpack.c.bf16 %v38_v15, %v37_v14  ;;  %v40_v18 = vld [vmem:[#allocation2 + $0xb0] sm:$0xff]  ;;  %v41_v20 = vld [vmem:[#allocation2 + $0xc0] sm:$0xff]  ;;  %p582_p11 = por %p581_p10, %p580_p9 }
  0x1a   :  { %v494_v19 = vpack.c.bf16 %v40_v18, %v39_v17  ;;  %v42_v21 = vld [vmem:[#allocation2 + $0xd0] sm:$0xff]  ;;  %v43_v23 = vld [vmem:[#allocation2 + $0xe0] sm:$0xff] }
  0x1b   :  { %483 = vmatpush3.bf16.msra.mxu0 %v482_v7  ;;  %v497_v22 = vpack.c.bf16 %v42_v21, %v41_v20  ;;  %v44_v24 = vld [vmem:[#allocation2 + $0xf0] sm:$0xff]  ;;  %v93_v26 = vld [vmem:[%s684_s0] sm:$0x3]  ;;  %p583_p12 = pnand %p582_p11, %p576_p8 }
  0x1c   :  { %484 = vmatprep.subr.bf16.mxu0 %v604_v0  ;;  %v500_v25 = vpack.c.bf16 %v44_v24, %v43_v23  ;;  %v45_v29 = vld [vmem:[#allocation2 + $0x100] sm:$0xff]  ;;  %v47_v31 = vld [vmem:[#allocation2 + $0x110] sm:$0xff] }
  0x1d   :  { %v504_v34 = vpack.c.bf16 %v47_v31, %v45_v29  ;;  %v49_v36 = vld [vmem:[#allocation2 + $0x120] sm:$0xff]  ;;  %v51_v37 = vld [vmem:[#allocation2 + $0x130] sm:$0xff] }
  0x1e   :  { %v508_v38 = vpack.c.bf16 %v51_v37, %v49_v36  ;;  %v85_v39 = vld [vmem:[%s686_s2] ss:$0 sm:$0xff]  ;;  %v387_v47 = vld [vmem:[%s686_s2 + $0x1] ss:$8 sm:$0x3]  ;;  %v70_v61 = vld [vmem:[#allocation2 + $0x250] sm:$0xff] }
  0x1f   :  { %486 = vmatpush3.bf16.msra.mxu0 %v485_v10  ;;  %505 = vmatpush1.bf16.msra.mxu1 %v504_v34  ;;  %v169_v49 = vrot.slane %v387_v47, %v646_v46  ;;  %v173_v50 = vrot.slane %v387_v47, %v651_v48  ;;  %v69_v60 = vld [vmem:[#allocation2 + $0x240] sm:$0xff]  ;;  %v72_v2 = vld [vmem:[#allocation2 + $0x270] sm:$0xff] }
  0x20   :  { %487 = vmatprep.subr.bf16.mxu0 %v604_v0  ;;  %507 = vmatprep.subr.bf16.mxu1 %v506_v35  ;;  %v53_v62 = vld [vmem:[#allocation2 + $0x140] sm:$0xff]  ;;  %v510_v63 = vpack.c.bf16 %v70_v61, %v69_v60  ;;  %v56_v6 = vld [vmem:[#allocation2 + $0x170] sm:$0xff] }
  0x21   :  { %v71_v1 = vld [vmem:[#allocation2 + $0x260] sm:$0xff]  ;;  %v74_v8 = vld [vmem:[#allocation2 + $0x290] sm:$0xff] }
  0x22   :  { %v514_v4 = vpack.c.bf16 %v72_v2, %v71_v1  ;;  %v55_v5 = vld [vmem:[#allocation2 + $0x160] sm:$0xff]  ;;  %v58_v12 = vld [vmem:[#allocation2 + $0x190] sm:$0xff] }
  0x23   :  { %489 = vmatpush3.bf16.msra.mxu0 %v488_v13  ;;  %509 = vmatpush1.bf16.msra.mxu1 %v508_v38  ;;  %v73_v7 = vld [vmem:[#allocation2 + $0x280] sm:$0xff]  ;;  %v516_v9 = vpack.c.bf16 %v56_v6, %v55_v5  ;;  %v76_v24 = vld [vmem:[#allocation2 + $0x2b0] sm:$0xff] }
  0x24   :  { %490 = vmatprep.subr.bf16.mxu0 %v604_v0  ;;  %511 = vmatprep.subr.bf16.mxu1 %v510_v63  ;;  %v518_v10 = vpack.c.bf16 %v74_v8, %v73_v7  ;;  %v57_v11 = vld [vmem:[#allocation2 + $0x180] sm:$0xff]  ;;  %v60_v27 = vld [vmem:[#allocation2 + $0x1b0] sm:$0xff] }
  0x25   :  { %v520_v13 = vpack.c.bf16 %v58_v12, %v57_v11  ;;  %v75_v23 = vld [vmem:[#allocation2 + $0x2a0] sm:$0xff]  ;;  %v78_v30 = vld [vmem:[#allocation2 + $0x2d0] sm:$0xff] }
  0x26   :  { %v77_v29 = vld [vmem:[#allocation2 + $0x2c0] sm:$0xff]  ;;  %v62_v33 = vld [vmem:[#allocation2 + $0x1d0] sm:$0xff] }
  0x27   :  { %492 = vmatpush3.bf16.msra.mxu0 %v491_v16  ;;  %v526_v31 = vpack.c.bf16 %v78_v30, %v77_v29  ;;  %v61_v32 = vld [vmem:[#allocation2 + $0x1c0] sm:$0xff]  ;;  %v80_v36 = vld [vmem:[#allocation2 + $0x2f0] sm:$0xff] }
  0x28   :  { %493 = vmatprep.subr.bf16.mxu0 %v604_v0  ;;  %v79_v34 = vld [vmem:[#allocation2 + $0x2e0] sm:$0xff]  ;;  %v528_v35 = vpack.c.bf16 %v62_v33, %v61_v32  ;;  %v64_v38 = vld [vmem:[#allocation2 + $0x1f0] sm:$0xff] }
  0x29   :  { %v63_v37 = vld [vmem:[#allocation2 + $0x1e0] sm:$0xff]  ;;  %v66_v45 = vld [vmem:[#allocation2 + $0x210] sm:$0xff] }
  0x2a   :  { %v65_v44 = vld [vmem:[#allocation2 + $0x200] sm:$0xff] }
  0x2b   :  { %495 = vmatpush3.bf16.msra.mxu0 %v494_v19  ;;  %v83_v47 = vld [vmem:[#allocation2 + $0x320] sm:$0xff] }
  0x2c   :  { %496 = vmatprep.subr.bf16.mxu0 %v604_v0  ;;  %v92_v8 = vld [vmem:[%s686_s2 + $0x4] ss:$0 sm:$0xff] }
  0x2f   :  { %498 = vmatpush3.bf16.msra.mxu0 %v497_v22 }
  0x30   :  { %499 = vmatprep.subr.bf16.mxu0 %v604_v0  ;;  %v54_v0 = vld [vmem:[#allocation2 + $0x150] sm:$0xff] }
  0x31   :  { %v512_v3 = vpack.c.bf16 %v54_v0, %v53_v62 }
  0x33   :  { %501 = vmatpush3.bf16.msra.mxu0 %v500_v25  ;;  %v522_v25 = vpack.c.bf16 %v76_v24, %v75_v23 }
  0x36   :  { %476 = vmatmul.mubr.f32.vlgmr.msra.gmra.mrb[0].mxu0 %v93_v26  ;;  %v59_v26 = vld [vmem:[#allocation2 + $0x1a0] sm:$0xff] }
  0x37   :  { %v524_v28 = vpack.c.bf16 %v60_v27, %v59_v26 }
 0x109   :  { %v160_v40 = vpop.f32.mrb[0].mxu0 }
 0x10a   :  { %v161_v41 = vadd.f32 %v160_v40, %v85_v39  ;;  %v477_v42 = vpop.f32.mrb[1].mxu0  ;;  %v530_v39 = vpack.c.bf16 %v80_v36, %v79_v34  ;;  %v81_v40 = vld [vmem:[#allocation2 + $0x300] sm:$0xff] }
 0x10b   :  { %v532_v42 = vpack.c.bf16 %v64_v38, %v63_v37 }
 0x10c   :  { %549 = vtanh.f32 %v161_v41  ;;  %v82_v41 = vld [vmem:[#allocation2 + $0x310] sm:$0xff] }
 0x116   :  { %v550_v43 = vpop.eup %549 }
 0x117   :  { %390 = vmatmul.mubr.msk.f32.vlgmr.msra.gmra.mrb[0].mxu1 %vm176_vm1, %v550_v43  ;;  %v534_v43 = vpack.c.bf16 %v82_v41, %v81_v40 }
 0x118   :  { %513 = vmatpush3.bf16.msra.mxu1 %v512_v3 }
 0x119   :  { %515 = vmatprep.subr.bf16.mxu1 %v514_v4 }
 0x11c   :  { %517 = vmatpush3.bf16.msra.mxu1 %v516_v9 }
 0x11d   :  { %519 = vmatprep.subr.bf16.mxu1 %v518_v10 }
 0x120   :  { %521 = vmatpush3.bf16.msra.mxu1 %v520_v13 }
 0x121   :  { %523 = vmatprep.subr.bf16.mxu1 %v522_v25 }
 0x124   :  { %525 = vmatpush3.bf16.msra.mxu1 %v524_v28 }
 0x125   :  { %527 = vmatprep.subr.bf16.mxu1 %v526_v31 }
 0x128   :  { %529 = vmatpush3.bf16.msra.mxu1 %v528_v35 }
 0x129   :  { %531 = vmatprep.subr.bf16.mxu1 %v530_v39 }
 0x12c   :  { %533 = vmatpush3.bf16.msra.mxu1 %v532_v42 }
 0x12d   :  { %535 = vmatprep.subr.bf16.mxu1 %v534_v43 }
 0x1ea   :  { %v246_v51 = vpop.f32.mrb[0].mxu1 }
 0x1eb   :  { %v247_v52 = vadd.f32 %v246_v51, %v169_v49  ;;  %v248_v53 = vpop.f32.mrb[1].mxu1  ;;  %v84_v49 = vld [vmem:[#allocation2 + $0x330] sm:$0xff] }
 0x1ec   :  { %v249_v54 = vadd.f32 %v248_v53, %v173_v50  ;;  %v536_v50 = vpack.c.bf16 %v66_v45, %v65_v44  ;;  %v538_v51 = vpack.c.bf16 %v84_v49, %v83_v47  ;;  %v68_v53 = vld [vmem:[#allocation2 + $0x230] sm:$0xff] }
 0x1ed   :  { %v251_v55 = vmax.f32 %v247_v52, 0.0  ;;  %v67_v52 = vld [vmem:[#allocation2 + $0x220] sm:$0xff] }
 0x1ee   :  { %v252_v56 = vmax.f32 %v249_v54, 0.0  ;;  %537 = vmatpush3.bf16.msra.mxu1 %v536_v50  ;;  %v540_v54 = vpack.c.bf16 %v68_v53, %v67_v52 }
 0x1ef   :  { %v254_v57 = vsel %vm253_vm2, %v251_v55, 0.0  ;;  %539 = vmatprep.subr.bf16.mxu1 %v538_v51 }
 0x1f0   :  { %v255_v58 = vsel %vm253_vm2, %v252_v56, 0.0 }
 0x1f1   :  { %v256_v59 = vadd.f32 %v255_v58, %v254_v57  ;;  %v388_v58 = vld [vmem:[%s686_s2 + $0x2] ss:$8 sm:$0x3] }
 0x1f2   :  { %541 = vmatpush3.bf16.msra.mxu1 %v540_v54  ;;  %v279_v60 = vrot.slane %v388_v58, %v646_v46  ;;  %v283_v61 = vrot.slane %v388_v58, %v651_v48 }
 0x1f3   :  { %257 = vadd.xlane.f32.xlu0 %v256_v59  ;;  %v389_v59 = vld [vmem:[%s686_s2 + $0x3] ss:$8 sm:$0x3] }
 0x1f4   :  { %v292_v0 = vrot.slane %v389_v59, %v646_v46  ;;  %v296_v1 = vrot.slane %v389_v59, %v651_v48 }
 0x280   :  { %v258_v14 = vpop.xlane.xlu0 %257 }
 0x281   :  { %v260_v15 = vmul.f32 0.00390625, %v258_v14 }
 0x283   :  { %v261_v16 = vsub.f32 %v251_v55, %v260_v15  ;;  %v262_v17 = vsub.f32 %v252_v56, %v260_v15 }
 0x285   :  { %v263_v18 = vmul.f32 %v261_v16, %v261_v16  ;;  %v264_v19 = vmul.f32 %v262_v17, %v262_v17 }
 0x287   :  { %v265_v20 = vsel %vm253_vm2, %v263_v18, 0.0  ;;  %v266_v21 = vsel %vm253_vm2, %v264_v19, 0.0 }
 0x288   :  { %v267_v22 = vadd.f32 %v266_v21, %v265_v20 }
 0x28a   :  { %268 = vadd.xlane.f32.xlu0 %v267_v22 }
 0x317   :  { %v269_v55 = vpop.xlane.xlu0 %268 }
 0x318   :  { %v270_v56 = vmul.f32 0.00390625, %v269_v55 }
 0x31a   :  { %v271_v57 = vadd.f32 1e-05, %v270_v56 }
 0x31c   :  { %551 = vrsqrt.f32 %v271_v57 }
 0x326   :  { %v552_v62 = vpop.eup %551 }
 0x327   :  { %v274_v63 = vmul.f32 %v552_v62, %v262_v17  ;;  %v273_v2 = vmul.f32 %v552_v62, %v261_v16 }
 0x329   :  { %v287_v3 = vmul.f32 %v283_v61, %v274_v63  ;;  %v286_v4 = vmul.f32 %v279_v60, %v273_v2 }
 0x32b   :  { %v300_v5 = vadd.f32 %v296_v1, %v287_v3  ;;  %v299_v6 = vadd.f32 %v292_v0, %v286_v4 }
 0x32d   :  { %365 = vmatprep.mubr.f32.mxu1 %v300_v5 }
 0x32e   :  { %366 = vmatmul.mubr.f32.vlgmr.msra.gmra.mrb[2].mxu1 %v299_v6 }
 0x401   :  { %v440_v7 = vpop.f32.mrb[2].mxu1 }
 0x402   :  { %v441_v9 = vpop.f32.mrb[3].mxu1 }
 0x403   :  { %v442_v10 = vadd.f32 %v441_v9, %v440_v7 }
 0x405   :  { %v368_v11 = vadd.f32 %v442_v10, %v92_v8 }
 0x407   :  { %371 = vst [vmem:[#allocation5] sm:$0x3] %v368_v11 }
 0x408   :  { %586 = shalt.err (!%p583_p12)
}
 0x409   :  { %s587_s14 = scalar_lea.hbm %s687_s3, 32 }
 0x40a   :  { %p588_p13 = scmp.ne.s32.totalorder %s687_s3, %s587_s14  ;;  %p591_p0 = scmp.lt.u32.totalorder %s587_s14, %s687_s3 }
 0x40c   :  { %p593_p1 = pnand %p591_p0, %p588_p13 }
 0x40e   :  { %596 = shalt.err (!%p593_p1)
}
 0x40f   :  { %381 = dma.vmem_to_hbm [thread:$0]  %s379_s10, 32, %s687_s3, [#allocation4]  }
 0x410   :  { %599 = dma.done.wait [#allocation4], 32  }
 0x411   :  { %600 = vsyncadd [#allocation4], 4294967264 }
 0x412   :  { %385 = vsyncpa [#allocation3], 1 }
 0x413   :  { %386 = vsyncpa [#allocation4], 1 }

</bundles_post_ra>
